<compile_context>
chip_gen: v7x
topology: tpu7x:2x2x1
jax: 0.10.0
libtpu: 0.0.40
codegen_flags: <defaults>
</compile_context>

<pallas_src>
import functools

import jax
import jax.numpy as jnp
from jax import lax
from jax.experimental import pallas as pl
from jax.experimental.pallas import tpu as pltpu


def _style_loss_kernel(a_ref, b_ref, o_ref, *, n_steps, tk, k_total, needs_mask):
    # a_ref, b_ref : (C, tk) tiles in VMEM
    # o_ref        : (1, C, C) f32 per-core partial of M = (A-B)(A+B)^T; the block
    #                index is constant along the K axis, so the block stays
    #                resident in VMEM and doubles as the accumulator.
    p = pl.program_id(0)   # core split ("parallel")
    k = pl.program_id(1)   # K-tile step ("arbitrary" reduction)

    @pl.when(k == 0)
    def _init():
        o_ref[...] = jnp.zeros_like(o_ref)

    a = a_ref[...]
    b = b_ref[...]
    if needs_mask:
        # Zero columns beyond the true K extent (partial tail tile and/or fully
        # out-of-range clamped tiles). Exact: zero columns contribute nothing
        # to the Gram products.
        blk = p * n_steps + k
        cols = blk * tk + lax.broadcasted_iota(jnp.int32, a.shape, 1)
        valid = cols < k_total
        a = jnp.where(valid, a, 0)
        b = jnp.where(valid, b, 0)

    d = a - b
    s = a + b
    # Contract on dim 1 of both operands: (A-B) @ (A+B).T without materializing
    # a transpose (same contraction pattern flash-attention uses for Q K^T).
    dn = (((1,), (1,)), ((), ()))
    m = lax.dot_general(d, s, dn, preferred_element_type=jnp.float32)
    o_ref[...] += m[None, :, :]


def style_loss(stl_features, gen_features, c, w, h, *, max_tk=None):
    """stl_features, gen_features: (c, w, h) arrays (any float dtype).
    Returns scalar f32 MSE between their Gram matrices ('mean' reduction)."""
    k_total = w * h
    a = stl_features.reshape(c, k_total)
    b = gen_features.reshape(c, k_total)
    itemsize = jnp.dtype(a.dtype).itemsize

    # ---- generation-aware VMEM budget / tile sizing -------------------------
    try:
        vmem_phys = int(pltpu.get_tpu_info().vmem_capacity_bytes)
    except Exception:
        vmem_phys = 64 << 20                      # conservative (v7x per-TC)
    vmem_budget = min(vmem_phys // 2, 48 << 20)   # leave ample headroom

    out_bytes = 2 * c * c * 4                     # resident (1, C, C) f32 block (x2 safety)
    per_col_bytes = 4 * c * itemsize              # 2 inputs x 2 pipeline buffers
    tk_cap = max(128, ((vmem_budget - out_bytes) // per_col_bytes) // 128 * 128)
    if max_tk is not None:                        # test hook: force small tiles
        tk_cap = max(128, min(tk_cap, (max_tk // 128) * 128))

    if tk_cap >= k_total:
        tk = k_total          # single block spanning all of K (full-dim block is legal)
    else:
        tk = tk_cap           # lane-dense multiple of 128

    n_blocks = pl.cdiv(k_total, tk)
    # Split K across v7x's two TensorCores; on 1-TC chips it is a short serial loop.
    n_split = 2 if n_blocks >= 2 else 1
    n_steps = pl.cdiv(n_blocks, n_split)
    needs_mask = (n_split * n_steps * tk) != k_total

    kernel = functools.partial(
        _style_loss_kernel,
        n_steps=n_steps, tk=tk, k_total=k_total, needs_mask=needs_mask)

    def in_map(p, k):
        # Clamp so a fully out-of-range step re-reads the last valid block;
        # its contribution is zeroed by the in-kernel mask.
        return (0, jnp.minimum(p * n_steps + k, n_blocks - 1))

    vmem_need = 4 * c * tk * itemsize + out_bytes + (2 << 20)
    vmem_limit = int(min(vmem_phys, max(vmem_budget, vmem_need)))

    cost = pl.CostEstimate(
        flops=2 * c * c * k_total,                               # one Gram-style matmul
        transcendentals=0,
        bytes_accessed=2 * c * k_total * itemsize + n_split * c * c * 4,
    )

    partials = pl.pallas_call(
        kernel,
        out_shape=jax.ShapeDtypeStruct((n_split, c, c), jnp.float32),
        grid=(n_split, n_steps),
        in_specs=[
            pl.BlockSpec((c, tk), in_map),
            pl.BlockSpec((c, tk), in_map),
        ],
        out_specs=pl.BlockSpec((1, c, c), lambda p, k: (p, 0, 0)),
        compiler_params=pltpu.CompilerParams(
            dimension_semantics=("parallel", "arbitrary"),
            vmem_limit_bytes=vmem_limit,
        ),
        cost_estimate=cost,
    )(a, b)

    # Tiny (C, C) epilogue in XLA: combine per-core partials, symmetrize
    # (sym((A-B)(A+B)^T) = A A^T - B B^T), then MSE with 'mean' reduction.
    m = jnp.sum(partials, axis=0)
    g_diff = 0.5 * (m + m.T)
    return jnp.mean(g_diff * g_diff)


if __name__ == "__main__":
    key = jax.random.PRNGKey(0)

    def ref_loss(stl, gen, c, w, h):
        # Pure-JAX reference (same math as the PyTorch module), full-precision dots.
        A = stl.reshape(c, w * h).astype(jnp.float32)
        B = gen.reshape(c, w * h).astype(jnp.float32)
        hi = lax.Precision.HIGHEST
        g_stl = jnp.matmul(A, A.T, precision=hi)
        g_gen = jnp.matmul(B, B.T, precision=hi)
        return jnp.mean((g_stl - g_gen) ** 2)

    # Case 1: small (c, w, h) feature maps; single-tile fast path (no mask, no split).
    c, w, h = 4, 16, 16
    k1, k2 = jax.random.split(key)
    stl = jax.random.normal(k1, (c, w, h), dtype=jnp.float32)
    gen = jax.random.normal(k2, (c, w, h), dtype=jnp.float32)
    loss = jax.block_until_ready(style_loss(stl, gen, c, w, h))
    ref = ref_loss(stl, gen, c, w, h)
    assert jnp.allclose(loss, ref, rtol=1e-5, atol=1e-5), (loss, ref)

    # Case 2: non-128-multiple K with forced 128-wide tiles to exercise the K-tiled
    # grid, the 2-way core split, tail masking and index clamping.
    c2, w2, h2 = 8, 20, 17
    k3, k4 = jax.random.split(k2)
    stl2 = jax.random.normal(k3, (c2, w2, h2), dtype=jnp.float32)
    gen2 = jax.random.normal(k4, (c2, w2, h2), dtype=jnp.float32)
    loss2 = jax.block_until_ready(style_loss(stl2, gen2, c2, w2, h2, max_tk=128))
    ref2 = ref_loss(stl2, gen2, c2, w2, h2)
    assert jnp.allclose(loss2, ref2, rtol=1e-5, atol=1e-5), (loss2, ref2)

    print("KERNEL_OK")
</pallas_src>

<mosaic_0001>
module attributes {stable_mosaic.version = 11 : i64} {
  func.func @_style_loss_kernel(%arg0: i32, %arg1: i32, %arg2: memref<4x256xf32, #tpu.memory_space<vmem>>, %arg3: memref<4x256xf32, #tpu.memory_space<vmem>>, %arg4: memref<1x4x4xf32, #tpu.memory_space<vmem>>) attributes {dimension_semantics = [#tpu.dimension_semantics<parallel>, #tpu.dimension_semantics<arbitrary>], iteration_bounds = array<i64: 1, 1>, scalar_prefetch = 0 : i64, scratch_operands = 0 : i64, tpu.core_type = #tpu.core_type<tc>, window_params = [{transform_indices = @transform_0, window_bounds = array<i64: 4, 256>}, {transform_indices = @transform_1, window_bounds = array<i64: 4, 256>}, {transform_indices = @transform_2, window_bounds = array<i64: 1, 4, 4>}]} {
    %c0_i32 = arith.constant 0 : i32
    %0 = arith.cmpi eq, %arg1, %c0_i32 : i32
    %1 = arith.extui %0 : i1 to i32
    %c0_i32_0 = arith.constant 0 : i32
    %2 = arith.cmpi ne, %1, %c0_i32_0 : i32
    scf.if %2 {
      %cst_10 = arith.constant 0.000000e+00 : f32
      %12 = vector.broadcast %cst_10 : f32 to vector<1x4x4xf32>
      %c0_11 = arith.constant 0 : index
      %c0_12 = arith.constant 0 : index
      %c0_13 = arith.constant 0 : index
      %13 = vector.load %arg4[%c0_11, %c0_12, %c0_13] : memref<1x4x4xf32, #tpu.memory_space<vmem>>, vector<1x4x4xf32>
      tpu.vector_store %arg4[%c0_11, %c0_12, %c0_13], %12 {strides = array<i32>} : memref<1x4x4xf32, #tpu.memory_space<vmem>>, vector<1x4x4xf32>,
    } else {
    }
    %c0 = arith.constant 0 : index
    %c0_1 = arith.constant 0 : index
    %3 = vector.load %arg2[%c0, %c0_1] : memref<4x256xf32, #tpu.memory_space<vmem>>, vector<4x256xf32>
    %c0_2 = arith.constant 0 : index
    %c0_3 = arith.constant 0 : index
    %4 = vector.load %arg3[%c0_2, %c0_3] : memref<4x256xf32, #tpu.memory_space<vmem>>, vector<4x256xf32>
    %5 = arith.subf %3, %4 : vector<4x256xf32>
    %6 = arith.addf %3, %4 : vector<4x256xf32>
    %cst = arith.constant dense<0.000000e+00> : vector<4x4xf32>
    %7 = tpu.matmul %5, %6, %cst {dimension_numbers = #tpu.dot_dimension_numbers<[1], [1], [0], [0], [0, 0, 1, 0], [], []>} : vector<4x256xf32>, vector<4x256xf32>, vector<4x4xf32> -> vector<4x4xf32>
    %c0_4 = arith.constant 0 : index
    %c0_5 = arith.constant 0 : index
    %c0_6 = arith.constant 0 : index
    %8 = vector.load %arg4[%c0_4, %c0_5, %c0_6] : memref<1x4x4xf32, #tpu.memory_space<vmem>>, vector<1x4x4xf32>
    %9 = vector.shape_cast %7 : vector<4x4xf32> to vector<1x4x4xf32>
    %10 = arith.addf %8, %9 : vector<1x4x4xf32>
    %c0_7 = arith.constant 0 : index
    %c0_8 = arith.constant 0 : index
    %c0_9 = arith.constant 0 : index
    %11 = vector.load %arg4[%c0_7, %c0_8, %c0_9] : memref<1x4x4xf32, #tpu.memory_space<vmem>>, vector<1x4x4xf32>
    tpu.vector_store %arg4[%c0_7, %c0_8, %c0_9], %10 {strides = array<i32>} : memref<1x4x4xf32, #tpu.memory_space<vmem>>, vector<1x4x4xf32>,
    return
  }
  func.func @transform_0(%arg0: i32, %arg1: i32) -> (i32, i32) {
    %c1_i32 = arith.constant 1 : i32
    %0 = arith.muli %arg0, %c1_i32 : i32
    %1 = arith.addi %0, %arg1 : i32
    %c0_i32 = arith.constant 0 : i32
    %2 = arith.minsi %1, %c0_i32 : i32
    %c0_i32_0 = arith.constant 0 : i32
    %c0_i32_1 = arith.constant 0 : i32
    return %c0_i32_0, %2 : i32, i32
  }
  func.func @transform_1(%arg0: i32, %arg1: i32) -> (i32, i32) {
    %c1_i32 = arith.constant 1 : i32
    %0 = arith.muli %arg0, %c1_i32 : i32
    %1 = arith.addi %0, %arg1 : i32
    %c0_i32 = arith.constant 0 : i32
    %2 = arith.minsi %1, %c0_i32 : i32
    %c0_i32_0 = arith.constant 0 : i32
    %c0_i32_1 = arith.constant 0 : i32
    return %c0_i32_0, %2 : i32, i32
  }
  func.func @transform_2(%arg0: i32, %arg1: i32) -> (i32, i32, i32) {
    %c0_i32 = arith.constant 0 : i32
    %c0_i32_0 = arith.constant 0 : i32
    %c0_i32_1 = arith.constant 0 : i32
    return %arg0, %c0_i32, %c0_i32_0 : i32, i32, i32
  }
}

</mosaic_0001>

<bundles_post_ra>
// kernel: tpu_custom_call.1
= control target key start
LH: loop header
LB: loop body
LE: loop exit
PB: predicated region body
PF: predicated region fallthrough
CT: control target
= control target key end

     0   :  { %7 = vsyncpa [#allocation3], 0  ;;  %s299_s0 = inlined_call_operand.hbm [shape: f32[4,256], index: 0, kind: input, shape index: {}]   ;;  %s300_s1 = inlined_call_operand.hbm [shape: f32[4,256], index: 1, kind: input, shape index: {}]   ;;  %s301_s2 = inlined_call_operand.hbm [shape: f32[1,4,4], index: 2, kind: output, shape index: {}]  }
   0x1   :  { %8 = vsyncpa [#allocation6], 0 }
   0x2   :  { %9 = vsyncpa [#allocation4], 0  ;;  %s242_s9 = smov [#allocation2]   ;;  %s243_s11 = smov [#allocation5]  }
   0x3   :  { %s22_s10 = sshll.u32 %s242_s9, 4  ;;  %s38_s12 = sshll.u32 %s243_s11, 4  ;;  %s23_s10 = int_to_ptr.vmem [resolvable:$true] %s22_s10  ;;  %s39_s12 = int_to_ptr.vmem [resolvable:$true] %s38_s12 }
   0x4   :  { %s170_s15 = scalar_lea.hbm %s299_s0, 128 }
   0x5   :  { %p171_p0 = scmp.ne.s32.totalorder %s299_s0, %s170_s15  ;;  %p174_p1 = scmp.lt.u32.totalorder %s170_s15, %s299_s0 }
   0x7   :  { %p176_p2 = pnand %p174_p1, %p171_p0 }
   0x9   :  { %179 = shalt.err (!%p176_p2)
}
   0xa   :  { %s180_s20 = scalar_lea.vmem %s23_s10, 128  ;;  %p185_p4 = scmp.lt.s32.totalorder %s23_s10, %s23_s10 }
   0xb   :  { %p181_p3 = scmp.ne.s32.totalorder %s23_s10, %s180_s20  ;;  %p186_p5 = scmp.lt.s32.totalorder %s180_s20, %s180_s20 }
   0xd   :  { %p187_p6 = por %p186_p5, %p185_p4 }
   0xf   :  { %p188_p7 = pnand %p187_p6, %p181_p3 }
  0x11   :  { %191 = shalt.err (!%p188_p7)
}
  0x12   :  { %25 = dma.hbm_to_vmem [thread:$0]  %s299_s0, 128, %s23_s10, [#allocation3]  }
  0x13   :  { %s192_s25 = scalar_lea.hbm %s300_s1, 128 }
  0x14   :  { %p193_p8 = scmp.ne.s32.totalorder %s300_s1, %s192_s25  ;;  %p196_p9 = scmp.lt.u32.totalorder %s192_s25, %s300_s1 }
  0x16   :  { %p198_p10 = pnand %p196_p9, %p193_p8 }
  0x18   :  { %201 = shalt.err (!%p198_p10)
}
  0x19   :  { %s202_s30 = scalar_lea.vmem %s39_s12, 128  ;;  %p207_p12 = scmp.lt.s32.totalorder %s39_s12, %s39_s12 }
  0x1a   :  { %p203_p11 = scmp.ne.s32.totalorder %s39_s12, %s202_s30  ;;  %p208_p13 = scmp.lt.s32.totalorder %s202_s30, %s202_s30 }
  0x1c   :  { %p209_p0 = por %p208_p13, %p207_p12 }
  0x1e   :  { %p210_p1 = pnand %p209_p0, %p203_p11 }
  0x20   :  { %213 = shalt.err (!%p210_p1)
}
  0x21   :  { %41 = dma.hbm_to_vmem [thread:$0]  %s300_s1, 128, %s39_s12, [#allocation6]  }
  0x22   :  { %236 = dma.done.wait [#allocation3], 128  }
  0x23   :  { %237 = vsyncadd [#allocation3], 4294967168 }
  0x24   :  { %238 = dma.done.wait [#allocation6], 128  }
  0x25   :  { %239 = vsyncadd [#allocation6], 4294967168  ;;  %vm60_vm0 = vcmask 27648   ;;  %v244_v0 = vmov 0.0   ;;  %v62_v1 = vld [vmem:[#allocation2] sm:$0xff]  ;;  %v63_v2 = vld [vmem:[#allocation5] sm:$0xff] }
  0x26   :  { %61 = vst.msk [vmem:[#allocation7] sm:$0xf] %vm60_vm0, %v244_v0  ;;  %v65_v3 = vadd.f32 %v63_v2, %v62_v1  ;;  %v64_v4 = vsub.f32 %v62_v1, %v63_v2  ;;  %s245_s1 = smov [#allocation7]  }
  0x27   :  { %s152_s4 = sshll.u32 %s245_s1, 4  ;;  %s153_s4 = int_to_ptr.vmem [resolvable:$true] %s152_s4 }
  0x28   :  { %v70_v5 = vcombine.high %v65_v3, %v65_v3  ;;  %v67_v6 = vcombine.high %v64_v4, %v64_v4  ;;  %s214_s5 = scalar_lea.vmem %s153_s4, 64  ;;  %p219_p3 = scmp.lt.s32.totalorder %s153_s4, %s153_s4 }
  0x29   :  { %p215_p2 = scmp.ne.s32.totalorder %s153_s4, %s214_s5  ;;  %p220_p4 = scmp.lt.s32.totalorder %s214_s5, %s214_s5 }
  0x2a   :  { %72 = vmatprep.subr.mxu0 %v70_v5  ;;  %136 = vmatprep.mubr.f32.mxu0 %v67_v6 }
  0x2b   :  { %73 = vmatpush1.xpose.msra.mxu0 %v65_v3  ;;  %p221_p5 = por %p220_p4, %p219_p3 }
  0x2d   :  { %v142_v7 = vld [vmem:[#allocation7] sm:$0xf]  ;;  %p222_p6 = pnand %p221_p5, %p215_p2 }
  0x2e   :  { %137 = vmatmul.mubr.f32.vlgmr.msra.gmra.mrb[0].mxu0 %v64_v4 }
 0x101   :  { %v138_v8 = vpop.f32.mrb[0].mxu0 }
 0x102   :  { %v143_v9 = vadd.f32 %v142_v7, %v138_v8  ;;  %v140_v10 = vpop.f32.mrb[1].mxu0 }
 0x104   :  { %145 = vst.msk [vmem:[#allocation7] sm:$0xf] %vm60_vm0, %v143_v9 }
 0x105   :  { %225 = shalt.err (!%p222_p6)
}
 0x106   :  { %s226_s8 = scalar_lea.hbm %s301_s2, 64 }
 0x107   :  { %p227_p7 = scmp.ne.s32.totalorder %s301_s2, %s226_s8  ;;  %p230_p8 = scmp.lt.u32.totalorder %s226_s8, %s301_s2 }
 0x109   :  { %p232_p9 = pnand %p230_p8, %p227_p7 }
 0x10b   :  { %235 = shalt.err (!%p232_p9)
}
 0x10c   :  { %155 = dma.vmem_to_hbm [thread:$0]  %s153_s4, 64, %s301_s2, [#allocation4]  }
 0x10d   :  { %240 = dma.done.wait [#allocation4], 64  }
 0x10e   :  { %241 = vsyncadd [#allocation4], 4294967232 }
 0x10f   :  { %159 = vsyncpa [#allocation3], 1 }
 0x110   :  { %160 = vsyncpa [#allocation6], 1 }
 0x111   :  { %161 = vsyncpa [#allocation4], 1 }

</bundles_post_ra>
